<compile_context>
chip_gen: v7x
topology: tpu7x:2x2x1
jax: 0.10.0
libtpu: 0.0.40
codegen_flags: <defaults>
</compile_context>

<pallas_src>
import jax
import jax.numpy as jnp
from jax.experimental import pallas as pl
from jax.experimental.pallas import tpu as pltpu

_MAX_LANE_WIDTH = 32768            # lane-dense last dim cap (32 KiB * 4B = 128 KiB/row f32)
_TARGET_TILE_BYTES = 4 * 1024 * 1024   # ~4 MiB per tile: >=85% of HBM roofline
_ROW_UNIT = 32                     # row multiple valid for f32 / bf16 / int8 packing


def _copy_kernel(x_ref, o_ref):
    # Pass the whole VMEM tile through unchanged.
    o_ref[...] = x_ref[...]


def _reslab(size, last_dim):
    """Choose a lane-dense (rows, width) slab for a flat array of `size` elems."""
    if size % 128 == 0:
        rows, width = size // 128, 128
        # Widen the last dim (keeps it a multiple of 128) while leaving enough
        # rows (>= 64) to still form at least two row tiles for megacore.
        while rows % 2 == 0 and width * 2 <= _MAX_LANE_WIDTH and rows // 2 >= 64:
            rows //= 2
            width *= 2
        return rows, width
    # Odd total size (e.g. the tiny (2, 32) case): single full-array block.
    n = max(last_dim, 1)
    return size // n, n


def _choose_row_tile(rows, width, itemsize):
    """Row tile sized by bytes (~4 MiB), multiple of 32, >=2 blocks when possible."""
    if rows <= _ROW_UNIT:
        return rows                                   # single full-extent block
    tm = max(1, _TARGET_TILE_BYTES // (width * itemsize))
    tm = max(_ROW_UNIT, (tm // _ROW_UNIT) * _ROW_UNIT)
    tm = min(tm, rows)
    if rows >= 2 * _ROW_UNIT:
        # Make sure grid[0] >= 2 so both v7x TensorCores get work.
        half = max(_ROW_UNIT, ((rows // 2) // _ROW_UNIT) * _ROW_UNIT)
        tm = min(tm, half)
    return tm


def vanilla_net_forward(x, params=None):
    """True forward pass of VanillaNet: identity. Best implementation is no kernel."""
    del params  # forward() never uses self.layer
    return x


@jax.jit
def vanilla_net_forward_pallas(x):
    """Pallas copy-kernel stand-in for the identity forward (for benchmarking)."""
    orig_shape = x.shape
    size = x.size
    if size == 0:
        return x

    last_dim = orig_shape[-1] if x.ndim >= 1 else 1
    rows, width = _reslab(size, last_dim)
    x2 = x.reshape(rows, width)

    itemsize = x2.dtype.itemsize
    tm = _choose_row_tile(rows, width, itemsize)
    grid = (pl.cdiv(rows, tm),)

    out = pl.pallas_call(
        _copy_kernel,
        out_shape=jax.ShapeDtypeStruct((rows, width), x2.dtype),
        grid=grid,
        in_specs=[pl.BlockSpec((tm, width), lambda i: (i, 0))],
        out_specs=pl.BlockSpec((tm, width), lambda i: (i, 0)),
        compiler_params=pltpu.CompilerParams(
            dimension_semantics=("parallel",),         # shard blocks across TCs (v7x)
            vmem_limit_bytes=32 * 1024 * 1024,         # covers 4x ~4 MiB tiles + scratch
        ),
        cost_estimate=pl.CostEstimate(
            flops=0, transcendentals=0, bytes_accessed=2 * size * itemsize
        ),
    )(x2)
    return out.reshape(orig_shape)


def init_vanilla_net_params(key, input_dim, output_dim, dtype=jnp.float32):
    """Deterministic init mirroring nn.Linear(input_dim, output_dim) (unused in forward)."""
    kw, kb = jax.random.split(key)
    bound = 1.0 / jnp.sqrt(jnp.asarray(input_dim, dtype))
    weight = jax.random.uniform(kw, (output_dim, input_dim), dtype, -bound, bound)
    bias = jax.random.uniform(kb, (output_dim,), dtype, -bound, bound)
    return {"weight": weight, "bias": bias}


if __name__ == "__main__":
    key = jax.random.PRNGKey(0)
    k_x, k_p, k_big = jax.random.split(key, 3)

    batch, input_dim, output_dim = 2, 32, 16
    x = jax.random.normal(k_x, (batch, input_dim), dtype=jnp.float32)
    params = init_vanilla_net_params(k_p, input_dim, output_dim)

    # Production hot path: identity, no kernel launch at all.
    assert vanilla_net_forward(x, params) is x

    # Pallas copy kernel, tiny odd shape -> single full-array block, grid=(1,).
    out = jax.block_until_ready(vanilla_net_forward_pallas(x))
    assert out.shape == x.shape and out.dtype == x.dtype
    assert bool(jnp.array_equal(out, x))

    # Moderate shape exercising the lane-dense re-slab + grid >= 2 path.
    x_big = jax.random.normal(k_big, (1024, 128), dtype=jnp.float32)
    out_big = jax.block_until_ready(vanilla_net_forward_pallas(x_big))
    assert out_big.shape == x_big.shape and out_big.dtype == x_big.dtype
    assert bool(jnp.array_equal(out_big, x_big))

    print("KERNEL_OK")
</pallas_src>

<mosaic_0001>
module attributes {stable_mosaic.version = 11 : i64} {
  func.func @_copy_kernel(%arg0: i32, %arg1: memref<2x32xf32, #tpu.memory_space<vmem>>, %arg2: memref<2x32xf32, #tpu.memory_space<vmem>>) attributes {dimension_semantics = [#tpu.dimension_semantics<parallel>], iteration_bounds = array<i64: 1>, scalar_prefetch = 0 : i64, scratch_operands = 0 : i64, tpu.core_type = #tpu.core_type<tc>, window_params = [{transform_indices = @transform_0, window_bounds = array<i64: 2, 32>}, {transform_indices = @transform_1, window_bounds = array<i64: 2, 32>}]} {
    %c0 = arith.constant 0 : index
    %c0_0 = arith.constant 0 : index
    %0 = vector.load %arg1[%c0, %c0_0] : memref<2x32xf32, #tpu.memory_space<vmem>>, vector<2x32xf32>
    %c0_1 = arith.constant 0 : index
    %c0_2 = arith.constant 0 : index
    %1 = vector.load %arg2[%c0_1, %c0_2] : memref<2x32xf32, #tpu.memory_space<vmem>>, vector<2x32xf32>
    tpu.vector_store %arg2[%c0_1, %c0_2], %0 {strides = array<i32>} : memref<2x32xf32, #tpu.memory_space<vmem>>, vector<2x32xf32>,
    return
  }
  func.func @transform_0(%arg0: i32) -> (i32, i32) {
    %c0_i32 = arith.constant 0 : i32
    %c0_i32_0 = arith.constant 0 : i32
    return %arg0, %c0_i32 : i32, i32
  }
  func.func @transform_1(%arg0: i32) -> (i32, i32) {
    %c0_i32 = arith.constant 0 : i32
    %c0_i32_0 = arith.constant 0 : i32
    return %arg0, %c0_i32 : i32, i32
  }
}

</mosaic_0001>

<bundles_post_ra>
// kernel: vanilla_net_forward_pallas.1
= control target key start
LH: loop header
LB: loop body
LE: loop exit
PB: predicated region body
PF: predicated region fallthrough
CT: control target
= control target key end

     0   :  { %6 = vsyncpa [#allocation3], 0  ;;  %s125_s0 = inlined_call_operand.hbm [shape: f32[2,32], index: 0, kind: input, shape index: {}]   ;;  %s126_s1 = inlined_call_operand.hbm [shape: f32[2,32], index: 1, kind: output, shape index: {}]  }
   0x1   :  { %7 = vsyncpa [#allocation4], 0  ;;  %s89_s6 = smov [#allocation2]   ;;  %s41_s10 = scalar_lea.hbm %s125_s0, 32 }
   0x2   :  { %s14_s7 = sshll.u32 %s89_s6, 4  ;;  %p42_p0 = scmp.ne.s32.totalorder %s125_s0, %s41_s10  ;;  %s15_s7 = int_to_ptr.vmem [resolvable:$true] %s14_s7 }
   0x3   :  { %p45_p1 = scmp.lt.u32.totalorder %s41_s10, %s125_s0 }
   0x5   :  { %p47_p2 = pnand %p45_p1, %p42_p0 }
   0x7   :  { %50 = shalt.err (!%p47_p2)
}
   0x8   :  { %s51_s15 = scalar_lea.vmem %s15_s7, 32  ;;  %p56_p4 = scmp.lt.s32.totalorder %s15_s7, %s15_s7 }
   0x9   :  { %p52_p3 = scmp.ne.s32.totalorder %s15_s7, %s51_s15  ;;  %p57_p5 = scmp.lt.s32.totalorder %s51_s15, %s51_s15 }
   0xb   :  { %p58_p6 = por %p57_p5, %p56_p4 }
   0xd   :  { %p59_p7 = pnand %p58_p6, %p52_p3 }
   0xf   :  { %62 = shalt.err (!%p59_p7)
}
  0x10   :  { %17 = dma.hbm_to_vmem [thread:$0]  %s125_s0, 32, %s15_s7, [#allocation3]  }
  0x11   :  { %85 = dma.done.wait [#allocation3], 32  }
  0x12   :  { %86 = vsyncadd [#allocation3], 4294967264  ;;  %s90_s18 = smov [#allocation5]   ;;  %vm22_vm0 = vcmask 254976   ;;  %v21_v0 = vld [vmem:[#allocation2] sm:$0x3] }
  0x13   :  { %s30_s19 = sshll.u32 %s90_s18, 4  ;;  %23 = vst.msk [vmem:[#allocation5] sm:$0x3] %vm22_vm0, %v21_v0  ;;  %s31_s19 = int_to_ptr.vmem [resolvable:$true] %s30_s19 }
  0x14   :  { %s63_s20 = scalar_lea.vmem %s31_s19, 32  ;;  %p68_p9 = scmp.lt.s32.totalorder %s31_s19, %s31_s19 }
  0x15   :  { %p64_p8 = scmp.ne.s32.totalorder %s31_s19, %s63_s20  ;;  %p69_p10 = scmp.lt.s32.totalorder %s63_s20, %s63_s20 }
  0x17   :  { %p70_p11 = por %p69_p10, %p68_p9 }
  0x19   :  { %p71_p12 = pnand %p70_p11, %p64_p8 }
  0x1b   :  { %74 = shalt.err (!%p71_p12)
}
  0x1c   :  { %s75_s23 = scalar_lea.hbm %s126_s1, 32 }
  0x1d   :  { %p76_p13 = scmp.ne.s32.totalorder %s126_s1, %s75_s23  ;;  %p79_p0 = scmp.lt.u32.totalorder %s75_s23, %s126_s1 }
  0x1f   :  { %p81_p1 = pnand %p79_p0, %p76_p13 }
  0x21   :  { %84 = shalt.err (!%p81_p1)
}
  0x22   :  { %33 = dma.vmem_to_hbm [thread:$0]  %s31_s19, 32, %s126_s1, [#allocation4]  }
  0x23   :  { %87 = dma.done.wait [#allocation4], 32  }
  0x24   :  { %88 = vsyncadd [#allocation4], 4294967264 }
  0x25   :  { %37 = vsyncpa [#allocation3], 1 }
  0x26   :  { %38 = vsyncpa [#allocation4], 1 }

</bundles_post_ra>
